<compile_context>
chip_gen: v6e
topology: v6e:2x2x1
jax: 0.10.0
libtpu: 0.0.40
codegen_flags: <defaults>
</compile_context>

<pallas_src>
import functools

import jax
import jax.numpy as jnp
from jax.experimental import pallas as pl
from jax.experimental.pallas import tpu as pltpu


def _dwconv_bn_silu_kernel(x_ref, p_ref, o_ref, xpad_ref, *,
                           k, dil, pad, H, W, Ho, Wo, C):
    """One batch element per grid step (stride == 1).

    x_ref:    (1, H, W*C)      unpadded input tile, lane-dense (w, c)-flattened
    p_ref:    (k*k + 1, Wo*C)  rows [0, k*k): BN-scale-folded depthwise weights tiled along W
                               row k*k: fused BN bias tiled along W
    o_ref:    (1, Ho, Wo*C)    output tile
    xpad_ref: (Hp, Wp*C) f32   VMEM scratch holding the zero-padded input
    """
    Hp = H + 2 * pad
    WpC = (W + 2 * pad) * C

    # --- build the zero-padded image in VMEM (replaces the wrapper-side jnp.pad HBM pass) ---
    if pad > 0:
        # Border strips rewritten every step: scratch contents are never assumed to persist
        # across grid steps / megacore partitions.
        xpad_ref[0:pad, :] = jnp.zeros((pad, WpC), jnp.float32)
        xpad_ref[pad + H:Hp, :] = jnp.zeros((Hp - pad - H, WpC), jnp.float32)
        xpad_ref[:, 0:pad * C] = jnp.zeros((Hp, pad * C), jnp.float32)
        xpad_ref[:, pad * C + W * C:WpC] = jnp.zeros((Hp, WpC - pad * C - W * C), jnp.float32)
    xpad_ref[pad:pad + H, pad * C:pad * C + W * C] = x_ref[0].astype(jnp.float32)

    # --- depthwise conv: k*k shifted multiply-adds on lane-dense tiles (pure VPU work) ---
    params = p_ref[...]                                   # (k*k+1, Wo*C), loaded once
    acc = jnp.zeros((Ho, Wo * C), jnp.float32)
    for kh in range(k):
        for kw in range(k):
            # Static Ref slice of the padded scratch -> (Ho, Wo*C); the kw shift is a
            # contiguous lane-window offset of kw*dil*C, the kh shift a row offset.
            tap = xpad_ref[kh * dil:kh * dil + Ho,
                           kw * dil * C:kw * dil * C + Wo * C]
            acc = acc + tap * params[kh * k + kw:kh * k + kw + 1, :]

    # Fused BN bias (scale already folded into the weights) + SiLU.
    y = acc + params[k * k:k * k + 1, :]
    o_ref[0] = (y * jax.nn.sigmoid(y)).astype(o_ref.dtype)


def dwconv_nop_forward_nhwc(x_nhwc, weight, gamma, beta, running_mean, running_var,
                            *, kernel_size, stride=1, dilation=1, eps=1e-5):
    """DWConvNoP forward on an NHWC tensor; returns NHWC. No layout passes."""
    if stride != 1:
        # TODO(synk): stride>1 depthwise path (needs a polyphase / strided-lane gather)
        # is not implemented in this Pallas kernel; the test config uses stride=1.
        raise NotImplementedError("this Pallas DWConvNoP kernel supports stride == 1 only")

    N, H, W, C = x_nhwc.shape
    k, d = kernel_size, dilation
    pad = (k - 1) * d // 2                      # matches BaseConv's padding rule
    Ho = H + 2 * pad - d * (k - 1)
    Wo = W + 2 * pad - d * (k - 1)
    Hp, Wp = H + 2 * pad, W + 2 * pad

    x_flat = x_nhwc.reshape(N, H, W * C)        # free reshape: merges the two minor dims

    # Fold BN (inference stats) into the conv parameters:
    #   scale = gamma / sqrt(var + eps);  w' = w * scale;  bias = beta - mean * scale
    scale = gamma / jnp.sqrt(running_var + eps)                                   # (C,)
    bias = beta - running_mean * scale                                            # (C,)
    w_taps = jnp.transpose(weight[:, 0, :, :], (1, 2, 0)).reshape(k * k, C) * scale
    params = jnp.concatenate(
        [jnp.tile(w_taps.astype(jnp.float32), (1, Wo)),                           # (k*k, Wo*C)
         jnp.tile(bias.astype(jnp.float32), (Wo,))[None, :]], axis=0)             # (1,   Wo*C)

    kernel = functools.partial(_dwconv_bn_silu_kernel, k=k, dil=d, pad=pad,
                               H=H, W=W, Ho=Ho, Wo=Wo, C=C)

    out_flat = pl.pallas_call(
        kernel,
        out_shape=jax.ShapeDtypeStruct((N, Ho, Wo * C), x_nhwc.dtype),
        grid_spec=pltpu.PrefetchScalarGridSpec(
            num_scalar_prefetch=0,
            grid=(N,),
            in_specs=[
                pl.BlockSpec((1, H, W * C), lambda n: (n, 0, 0)),
                pl.BlockSpec((k * k + 1, Wo * C), lambda n: (0, 0)),
            ],
            out_specs=pl.BlockSpec((1, Ho, Wo * C), lambda n: (n, 0, 0)),
            scratch_shapes=[pltpu.VMEM((Hp, Wp * C), jnp.float32)],
        ),
        compiler_params=pltpu.CompilerParams(
            dimension_semantics=("parallel",),
            vmem_limit_bytes=64 * 1024 * 1024),
    )(x_flat, params)

    return out_flat.reshape(N, Ho, Wo, C)


def dwconv_nop_forward(x_nchw, weight, gamma, beta, running_mean, running_var,
                       *, kernel_size, stride=1, dilation=1, eps=1e-5):
    """PyTorch-compatible (NCHW in / NCHW out) wrapper. In an NHWC end-to-end network
    call dwconv_nop_forward_nhwc directly and these two layout passes disappear."""
    x_nhwc = jnp.transpose(x_nchw, (0, 2, 3, 1))
    out_nhwc = dwconv_nop_forward_nhwc(
        x_nhwc, weight, gamma, beta, running_mean, running_var,
        kernel_size=kernel_size, stride=stride, dilation=dilation, eps=eps)
    return jnp.transpose(out_nhwc, (0, 3, 1, 2))


def _reference(x_nchw, weight, gamma, beta, running_mean, running_var,
               *, kernel_size, stride=1, dilation=1, eps=1e-5):
    """Pure-JAX reference (lax depthwise conv + BN + SiLU)."""
    C = x_nchw.shape[1]
    pad = (kernel_size - 1) * dilation // 2
    y = jax.lax.conv_general_dilated(
        x_nchw, weight,
        window_strides=(stride, stride),
        padding=[(pad, pad), (pad, pad)],
        rhs_dilation=(dilation, dilation),
        dimension_numbers=("NCHW", "OIHW", "NCHW"),
        feature_group_count=C)
    scale = gamma / jnp.sqrt(running_var + eps)
    bias = beta - running_mean * scale
    y = y * scale[None, :, None, None] + bias[None, :, None, None]
    return y * jax.nn.sigmoid(y)


if __name__ == "__main__":
    # DWConvNoP(in_channels=8, out_channels=8, kernel_size=3): W*C = 16*8 = 128 -> lane-dense.
    N, C, H, W = 2, 8, 16, 16
    k, stride, dilation = 3, 1, 1

    key = jax.random.PRNGKey(0)
    kx, kw_, kg, kb, km, kv = jax.random.split(key, 6)
    x = jax.random.normal(kx, (N, C, H, W), dtype=jnp.float32)
    weight = jax.random.normal(kw_, (C, 1, k, k), dtype=jnp.float32) * 0.1  # depthwise conv weight
    gamma = 1.0 + 0.1 * jax.random.normal(kg, (C,), dtype=jnp.float32)      # BN weight
    beta = 0.1 * jax.random.normal(kb, (C,), dtype=jnp.float32)             # BN bias
    running_mean = 0.1 * jax.random.normal(km, (C,), dtype=jnp.float32)     # BN running stats
    running_var = 1.0 + 0.1 * jnp.abs(jax.random.normal(kv, (C,), dtype=jnp.float32))
    # TODO(synk): PyTorch BatchNorm2d in training mode uses batch statistics; this kernel
    # implements inference (running-stats) semantics.

    fwd = jax.jit(functools.partial(dwconv_nop_forward, kernel_size=k,
                                    stride=stride, dilation=dilation))
    out = fwd(x, weight, gamma, beta, running_mean, running_var)
    out = jax.block_until_ready(out)

    ref = _reference(x, weight, gamma, beta, running_mean, running_var,
                     kernel_size=k, stride=stride, dilation=dilation)
    assert out.shape == ref.shape
    assert jnp.allclose(out, ref, atol=5e-5, rtol=5e-5), "mismatch vs reference"
    print("KERNEL_OK")
</pallas_src>

<mosaic_0001>
module attributes {stable_mosaic.version = 11 : i64} {
  func.func @_dwconv_bn_silu_kernel(%arg0: i32, %arg1: memref<1x16x128xf32, #tpu.memory_space<vmem>>, %arg2: memref<10x128xf32, #tpu.memory_space<vmem>>, %arg3: memref<1x16x128xf32, #tpu.memory_space<vmem>>, %arg4: memref<18x144xf32, #tpu.memory_space<vmem>>) attributes {dimension_semantics = [#tpu.dimension_semantics<parallel>], iteration_bounds = array<i64: 2>, scalar_prefetch = 0 : i64, scratch_operands = 1 : i64, tpu.core_type = #tpu.core_type<tc>, window_params = [{transform_indices = @transform_0, window_bounds = array<i64: 1, 16, 128>}, {pipeline_mode = #tpu.pipeline_mode<synchronous>, transform_indices = @transform_1, window_bounds = array<i64: 10, 128>}, {transform_indices = @transform_2, window_bounds = array<i64: 1, 16, 128>}]} {
    %cst = arith.constant 0.000000e+00 : f32
    %0 = vector.broadcast %cst : f32 to vector<1x144xf32>
    %c0 = arith.constant 0 : index
    %c0_0 = arith.constant 0 : index
    %1 = vector.load %arg4[%c0, %c0_0] : memref<18x144xf32, #tpu.memory_space<vmem>>, vector<1x144xf32>
    tpu.vector_store %arg4[%c0, %c0_0], %0 {strides = array<i32>} : memref<18x144xf32, #tpu.memory_space<vmem>>, vector<1x144xf32>,
    %cst_1 = arith.constant 0.000000e+00 : f32
    %2 = vector.broadcast %cst_1 : f32 to vector<1x144xf32>
    %c17 = arith.constant 17 : index
    %c0_2 = arith.constant 0 : index
    %3 = vector.load %arg4[%c17, %c0_2] : memref<18x144xf32, #tpu.memory_space<vmem>>, vector<1x144xf32>
    tpu.vector_store %arg4[%c17, %c0_2], %2 {strides = array<i32>} : memref<18x144xf32, #tpu.memory_space<vmem>>, vector<1x144xf32>,
    %cst_3 = arith.constant 0.000000e+00 : f32
    %4 = vector.broadcast %cst_3 : f32 to vector<18x8xf32>
    %c0_4 = arith.constant 0 : index
    %c0_5 = arith.constant 0 : index
    %5 = vector.load %arg4[%c0_4, %c0_5] : memref<18x144xf32, #tpu.memory_space<vmem>>, vector<18x8xf32>
    tpu.vector_store %arg4[%c0_4, %c0_5], %4 {strides = array<i32>} : memref<18x144xf32, #tpu.memory_space<vmem>>, vector<18x8xf32>,
    %cst_6 = arith.constant 0.000000e+00 : f32
    %6 = vector.broadcast %cst_6 : f32 to vector<18x8xf32>
    %c0_7 = arith.constant 0 : index
    %c136 = arith.constant 136 : index
    %7 = vector.load %arg4[%c0_7, %c136] : memref<18x144xf32, #tpu.memory_space<vmem>>, vector<18x8xf32>
    tpu.vector_store %arg4[%c0_7, %c136], %6 {strides = array<i32>} : memref<18x144xf32, #tpu.memory_space<vmem>>, vector<18x8xf32>,
    %c0_8 = arith.constant 0 : index
    %c0_9 = arith.constant 0 : index
    %c0_10 = arith.constant 0 : index
    %8 = vector.load %arg1[%c0_8, %c0_9, %c0_10] : memref<1x16x128xf32, #tpu.memory_space<vmem>>, vector<1x16x128xf32>
    %9 = vector.shape_cast %8 : vector<1x16x128xf32> to vector<16x128xf32>
    %c1 = arith.constant 1 : index
    %c8 = arith.constant 8 : index
    %10 = vector.load %arg4[%c1, %c8] : memref<18x144xf32, #tpu.memory_space<vmem>>, vector<16x128xf32>
    tpu.vector_store %arg4[%c1, %c8], %9 {strides = array<i32>} : memref<18x144xf32, #tpu.memory_space<vmem>>, vector<16x128xf32>,
    %c0_11 = arith.constant 0 : index
    %c0_12 = arith.constant 0 : index
    %11 = vector.load %arg2[%c0_11, %c0_12] : memref<10x128xf32, #tpu.memory_space<vmem>>, vector<10x128xf32>
    %cst_13 = arith.constant 0.000000e+00 : f32
    %12 = vector.broadcast %cst_13 : f32 to vector<16x128xf32>
    %c0_14 = arith.constant 0 : index
    %c0_15 = arith.constant 0 : index
    %13 = vector.load %arg4[%c0_14, %c0_15] : memref<18x144xf32, #tpu.memory_space<vmem>>, vector<16x128xf32>
    %14 = vector.extract_strided_slice %11 {offsets = [0, 0], sizes = [1, 128], strides = [1, 1]} : vector<10x128xf32> to vector<1x128xf32>
    %15 = vector.broadcast %14 : vector<1x128xf32> to vector<16x128xf32>
    %16 = arith.mulf %13, %15 : vector<16x128xf32>
    %17 = arith.addf %12, %16 : vector<16x128xf32>
    %c0_16 = arith.constant 0 : index
    %c8_17 = arith.constant 8 : index
    %18 = vector.load %arg4[%c0_16, %c8_17] : memref<18x144xf32, #tpu.memory_space<vmem>>, vector<16x128xf32>
    %19 = vector.extract_strided_slice %11 {offsets = [1, 0], sizes = [1, 128], strides = [1, 1]} : vector<10x128xf32> to vector<1x128xf32>
    %20 = vector.broadcast %19 : vector<1x128xf32> to vector<16x128xf32>
    %21 = arith.mulf %18, %20 : vector<16x128xf32>
    %22 = arith.addf %17, %21 : vector<16x128xf32>
    %c0_18 = arith.constant 0 : index
    %c16 = arith.constant 16 : index
    %23 = vector.load %arg4[%c0_18, %c16] : memref<18x144xf32, #tpu.memory_space<vmem>>, vector<16x128xf32>
    %24 = vector.extract_strided_slice %11 {offsets = [2, 0], sizes = [1, 128], strides = [1, 1]} : vector<10x128xf32> to vector<1x128xf32>
    %25 = vector.broadcast %24 : vector<1x128xf32> to vector<16x128xf32>
    %26 = arith.mulf %23, %25 : vector<16x128xf32>
    %27 = arith.addf %22, %26 : vector<16x128xf32>
    %c1_19 = arith.constant 1 : index
    %c0_20 = arith.constant 0 : index
    %28 = vector.load %arg4[%c1_19, %c0_20] : memref<18x144xf32, #tpu.memory_space<vmem>>, vector<16x128xf32>
    %29 = vector.extract_strided_slice %11 {offsets = [3, 0], sizes = [1, 128], strides = [1, 1]} : vector<10x128xf32> to vector<1x128xf32>
    %30 = vector.broadcast %29 : vector<1x128xf32> to vector<16x128xf32>
    %31 = arith.mulf %28, %30 : vector<16x128xf32>
    %32 = arith.addf %27, %31 : vector<16x128xf32>
    %c1_21 = arith.constant 1 : index
    %c8_22 = arith.constant 8 : index
    %33 = vector.load %arg4[%c1_21, %c8_22] : memref<18x144xf32, #tpu.memory_space<vmem>>, vector<16x128xf32>
    %34 = vector.extract_strided_slice %11 {offsets = [4, 0], sizes = [1, 128], strides = [1, 1]} : vector<10x128xf32> to vector<1x128xf32>
    %35 = vector.broadcast %34 : vector<1x128xf32> to vector<16x128xf32>
    %36 = arith.mulf %33, %35 : vector<16x128xf32>
    %37 = arith.addf %32, %36 : vector<16x128xf32>
    %c1_23 = arith.constant 1 : index
    %c16_24 = arith.constant 16 : index
    %38 = vector.load %arg4[%c1_23, %c16_24] : memref<18x144xf32, #tpu.memory_space<vmem>>, vector<16x128xf32>
    %39 = vector.extract_strided_slice %11 {offsets = [5, 0], sizes = [1, 128], strides = [1, 1]} : vector<10x128xf32> to vector<1x128xf32>
    %40 = vector.broadcast %39 : vector<1x128xf32> to vector<16x128xf32>
    %41 = arith.mulf %38, %40 : vector<16x128xf32>
    %42 = arith.addf %37, %41 : vector<16x128xf32>
    %c2 = arith.constant 2 : index
    %c0_25 = arith.constant 0 : index
    %43 = vector.load %arg4[%c2, %c0_25] : memref<18x144xf32, #tpu.memory_space<vmem>>, vector<16x128xf32>
    %44 = vector.extract_strided_slice %11 {offsets = [6, 0], sizes = [1, 128], strides = [1, 1]} : vector<10x128xf32> to vector<1x128xf32>
    %45 = vector.broadcast %44 : vector<1x128xf32> to vector<16x128xf32>
    %46 = arith.mulf %43, %45 : vector<16x128xf32>
    %47 = arith.addf %42, %46 : vector<16x128xf32>
    %c2_26 = arith.constant 2 : index
    %c8_27 = arith.constant 8 : index
    %48 = vector.load %arg4[%c2_26, %c8_27] : memref<18x144xf32, #tpu.memory_space<vmem>>, vector<16x128xf32>
    %49 = vector.extract_strided_slice %11 {offsets = [7, 0], sizes = [1, 128], strides = [1, 1]} : vector<10x128xf32> to vector<1x128xf32>
    %50 = vector.broadcast %49 : vector<1x128xf32> to vector<16x128xf32>
    %51 = arith.mulf %48, %50 : vector<16x128xf32>
    %52 = arith.addf %47, %51 : vector<16x128xf32>
    %c2_28 = arith.constant 2 : index
    %c16_29 = arith.constant 16 : index
    %53 = vector.load %arg4[%c2_28, %c16_29] : memref<18x144xf32, #tpu.memory_space<vmem>>, vector<16x128xf32>
    %54 = vector.extract_strided_slice %11 {offsets = [8, 0], sizes = [1, 128], strides = [1, 1]} : vector<10x128xf32> to vector<1x128xf32>
    %55 = vector.broadcast %54 : vector<1x128xf32> to vector<16x128xf32>
    %56 = arith.mulf %53, %55 : vector<16x128xf32>
    %57 = arith.addf %52, %56 : vector<16x128xf32>
    %58 = vector.extract_strided_slice %11 {offsets = [9, 0], sizes = [1, 128], strides = [1, 1]} : vector<10x128xf32> to vector<1x128xf32>
    %59 = vector.broadcast %58 : vector<1x128xf32> to vector<16x128xf32>
    %60 = arith.addf %57, %59 : vector<16x128xf32>
    %61 = arith.negf %60 : vector<16x128xf32>
    %62 = math.exp %61 : vector<16x128xf32>
    %cst_30 = arith.constant 1.000000e+00 : f32
    %63 = vector.broadcast %cst_30 : f32 to vector<16x128xf32>
    %64 = arith.addf %63, %62 : vector<16x128xf32>
    %65 = arith.divf %63, %64 : vector<16x128xf32>
    %66 = arith.mulf %60, %65 : vector<16x128xf32>
    %c0_31 = arith.constant 0 : index
    %c0_32 = arith.constant 0 : index
    %c0_33 = arith.constant 0 : index
    %67 = vector.load %arg3[%c0_31, %c0_32, %c0_33] : memref<1x16x128xf32, #tpu.memory_space<vmem>>, vector<1x16x128xf32>
    %68 = vector.shape_cast %67 : vector<1x16x128xf32> to vector<16x128xf32>
    %69 = vector.shape_cast %66 : vector<16x128xf32> to vector<1x16x128xf32>
    tpu.vector_store %arg3[%c0_31, %c0_32, %c0_33], %69 {strides = array<i32>} : memref<1x16x128xf32, #tpu.memory_space<vmem>>, vector<1x16x128xf32>,
    return
  }
  func.func @transform_0(%arg0: i32) -> (i32, i32, i32) {
    %c0_i32 = arith.constant 0 : i32
    %c0_i32_0 = arith.constant 0 : i32
    %c0_i32_1 = arith.constant 0 : i32
    return %arg0, %c0_i32, %c0_i32_0 : i32, i32, i32
  }
  func.func @transform_1(%arg0: i32) -> (i32, i32) {
    %c0_i32 = arith.constant 0 : i32
    %c0_i32_0 = arith.constant 0 : i32
    %c0_i32_1 = arith.constant 0 : i32
    return %c0_i32, %c0_i32_0 : i32, i32
  }
  func.func @transform_2(%arg0: i32) -> (i32, i32, i32) {
    %c0_i32 = arith.constant 0 : i32
    %c0_i32_0 = arith.constant 0 : i32
    %c0_i32_1 = arith.constant 0 : i32
    return %arg0, %c0_i32, %c0_i32_0 : i32, i32, i32
  }
}

</mosaic_0001>

<bundles_post_ra>
// kernel: tile.18
= control target key start
LH: loop header
LB: loop body
LE: loop exit
PB: predicated region body
PF: predicated region fallthrough
CT: control target
= control target key end

     0   :  { %s28_s0 = inlined_call_operand.vmem [shape: f32[8], index: 0, kind: input, shape index: {}]   ;;  %s29_s1 = inlined_call_operand.vmem [shape: f32[16,8], index: 1, kind: output, shape index: {}]  }
   0x1   :  { %v4_v0 = vld [vmem:[%s28_s0] ss:$0 sm:$0xff] }
   0x2   :  { %5 = vst [vmem:[%s29_s1] sm:$0xff] %v4_v0  ;;  %8 = vst [vmem:[%s29_s1 + $0x8] sm:$0xff] %v4_v0 }

// kernel: tile.19
= control target key start
LH: loop header
LB: loop body
LE: loop exit
PB: predicated region body
PF: predicated region fallthrough
CT: control target
= control target key end

     0   :  { %s133_s10 = smov 120   ;;  %s134_s11 = smov 104   ;;  %vm3_vm0 = vcmask 64512   ;;  %vm9_vm1 = vcmask 1048512   ;;  %vm15_vm2 = vcmask 982912   ;;  %vm21_vm3 = vcmask 917312   ;;  %s209_s0 = inlined_call_operand.vmem [shape: f32[16,8], index: 0, kind: input, shape index: {}]   ;;  %s210_s1 = inlined_call_operand.vmem [shape: f32[1,128], index: 1, kind: output, shape index: {}]  }
   0x1   :  { %v103_v0 = vld [vmem:[%s209_s0 + $0xf] sm:$0x1]   ;;  %v105_v1 = vld [vmem:[%s209_s0 + $0xd] sm:$0x1]   ;;  %v104_v2 = vld [vmem:[%s209_s0 + $0xe] sm:$0x1]  }
   0x2   :  { %7 = vrot.lane.b32.xlu0 %v103_v0, %s133_s10  ;;  %19 = vrot.lane.b32.xlu1 %v105_v1, %s134_s11  ;;  %v106_v3 = vld [vmem:[%s209_s0 + $0xc] sm:$0x1]   ;;  %s135_s16 = smov 112   ;;  %s136_s17 = smov 96   ;;  %v107_v4 = vld [vmem:[%s209_s0 + $0xb] sm:$0x1]  }
   0x3   :  { %v108_v5 = vld [vmem:[%s209_s0 + $0xa] sm:$0x1]   ;;  %v2_v6 = vld [vmem:[%s209_s0] sm:$0x1]   ;;  %s137_s24 = smov 88   ;;  %s138_s25 = smov 80  }
   0x4   :  { %4 = vst.msk [vmem:[#allocation0] sm:$0x1] %vm3_vm0, %v2_v6   ;;  %v109_v7 = vld [vmem:[%s209_s0 + $0x9] sm:$0x1]   ;;  %v110_v8 = vld [vmem:[%s209_s0 + $0x8] sm:$0x1]  }
   0x5   :  { %s139_s30 = smov 72   ;;  %s140_s2 = smov 64   ;;  %v111_v9 = vld [vmem:[%s209_s0 + $0x7] sm:$0x1]   ;;  %v112_v10 = vld [vmem:[%s209_s0 + $0x6] sm:$0x1]  }
   0x6   :  { %13 = vrot.lane.b32.xlu0 %v104_v2, %s135_s16  ;;  %25 = vrot.lane.b32.xlu1 %v106_v3, %s136_s17  ;;  %s141_s7 = smov 56   ;;  %s142_s8 = smov 48   ;;  %v113_v11 = vld [vmem:[%s209_s0 + $0x5] sm:$0x1]   ;;  %v114_v12 = vld [vmem:[%s209_s0 + $0x4] sm:$0x1]  }
   0x7   :  { %s143_s13 = smov 40   ;;  %s144_s14 = smov 32   ;;  %v115_v13 = vld [vmem:[%s209_s0 + $0x3] sm:$0x1]   ;;  %v116_v14 = vld [vmem:[%s209_s0 + $0x2] sm:$0x1]  }
   0x8   :  { %s145_s19 = smov 24   ;;  %s146_s20 = smov 16   ;;  %v117_v15 = vld [vmem:[%s209_s0 + $0x1] sm:$0x1]   ;;  %vm27_vm4 = vcmask 851712   ;;  %vm33_vm5 = vcmask 786112  }
   0x9   :  { %s147_s0 = smov 8   ;;  %vm39_vm6 = vcmask 720512   ;;  %vm45_vm7 = vcmask 654912   ;;  %vm51_vm8 = vcmask 589312   ;;  %vm57_vm9 = vcmask 523712  }
   0xa   :  { %31 = vrot.lane.b32.xlu0 %v107_v4, %s137_s24  ;;  %37 = vrot.lane.b32.xlu1 %v108_v5, %s138_s25  ;;  %vm63_vm10 = vcmask 458112   ;;  %vm69_vm11 = vcmask 392512   ;;  %vm75_vm12 = vcmask 326912   ;;  %vm81_vm13 = vcmask 261312  }
   0xb   :  { %vm87_vm14 = vcmask 195712   ;;  %vm93_vm15 = vcmask 130112  }
   0xe   :  { %43 = vrot.lane.b32.xlu0 %v109_v7, %s139_s30  ;;  %49 = vrot.lane.b32.xlu1 %v110_v8, %s140_s2 }
  0x12   :  { %55 = vrot.lane.b32.xlu0 %v111_v9, %s141_s7  ;;  %61 = vrot.lane.b32.xlu1 %v112_v10, %s142_s8 }
  0x16   :  { %67 = vrot.lane.b32.xlu0 %v113_v11, %s143_s13  ;;  %73 = vrot.lane.b32.xlu1 %v114_v12, %s144_s14 }
  0x1a   :  { %79 = vrot.lane.b32.xlu0 %v115_v13, %s145_s19  ;;  %85 = vrot.lane.b32.xlu1 %v116_v14, %s146_s20 }
  0x1e   :  { %91 = vrot.lane.b32.xlu0 %v117_v15, %s147_s0 }
  0x74   :  { %v8_v16 = vpop.permute.xlu0 %7   ;;  %v20_v17 = vpop.permute.xlu1 %19  }
  0x75   :  { %10 = vst.msk [vmem:[#allocation0] sm:$0x1] %vm9_vm1, %v8_v16  }
  0x78   :  { %v14_v18 = vpop.permute.xlu0 %13   ;;  %v26_v19 = vpop.permute.xlu1 %25  }
  0x79   :  { %16 = vst.msk [vmem:[#allocation0] sm:$0x1] %vm15_vm2, %v14_v18  }
  0x7a   :  { %22 = vst.msk [vmem:[#allocation0] sm:$0x1] %vm21_vm3, %v20_v17  }
  0x7b   :  { %28 = vst.msk [vmem:[#allocation0] sm:$0x1] %vm27_vm4, %v26_v19  }
  0x7c   :  { %v32_v20 = vpop.permute.xlu0 %31   ;;  %v38_v21 = vpop.permute.xlu1 %37  }
  0x7d   :  { %34 = vst.msk [vmem:[#allocation0] sm:$0x1] %vm33_vm5, %v32_v20  }
  0x7e   :  { %40 = vst.msk [vmem:[#allocation0] sm:$0x1] %vm39_vm6, %v38_v21  }
  0x80   :  { %v44_v22 = vpop.permute.xlu0 %43   ;;  %v50_v23 = vpop.permute.xlu1 %49  }
  0x81   :  { %46 = vst.msk [vmem:[#allocation0] sm:$0x1] %vm45_vm7, %v44_v22  }
  0x82   :  { %52 = vst.msk [vmem:[#allocation0] sm:$0x1] %vm51_vm8, %v50_v23  }
  0x84   :  { %v56_v24 = vpop.permute.xlu0 %55   ;;  %v62_v25 = vpop.permute.xlu1 %61  }
  0x85   :  { %58 = vst.msk [vmem:[#allocation0] sm:$0x1] %vm57_vm9, %v56_v24  }
  0x86   :  { %64 = vst.msk [vmem:[#allocation0] sm:$0x1] %vm63_vm10, %v62_v25  }
  0x88   :  { %v68_v26 = vpop.permute.xlu0 %67   ;;  %v74_v27 = vpop.permute.xlu1 %73  }
  0x89   :  { %70 = vst.msk [vmem:[#allocation0] sm:$0x1] %vm69_vm11, %v68_v26  }
  0x8a   :  { %76 = vst.msk [vmem:[#allocation0] sm:$0x1] %vm75_vm12, %v74_v27  }
  0x8c   :  { %v80_v28 = vpop.permute.xlu0 %79   ;;  %v86_v29 = vpop.permute.xlu1 %85  }
  0x8d   :  { %82 = vst.msk [vmem:[#allocation0] sm:$0x1] %vm81_vm13, %v80_v28  }
  0x8e   :  { %88 = vst.msk [vmem:[#allocation0] sm:$0x1] %vm87_vm14, %v86_v29  }
  0x90   :  { %v92_v30 = vpop.permute.xlu0 %91  }
  0x91   :  { %94 = vst.msk [vmem:[#allocation0] sm:$0x1] %vm93_vm15, %v92_v30  }
  0x98   :  { %v99_v31 = vld [vmem:[#allocation0] sm:$0x1] }
  0x99   :  { %102 = vst [vmem:[%s210_s1] sm:$0x1] %v99_v31 }

// kernel: tile.14
= control target key start
LH: loop header
LB: loop body
LE: loop exit
PB: predicated region body
PF: predicated region fallthrough
CT: control target
= control target key end

     0   :  { %vm6_vm0 = vcmask 1043458   ;;  %s53_s10 = smov 3  ;;  %s56_s11 = smov 12  ;;  %vm10_vm1 = vcmask 1045508   ;;  %vm14_vm2 = vcmask 1047558   ;;  %vm16_vm3 = vcmask 64512   ;;  %s978_s0 = inlined_call_operand.vmem [shape: f32[9,16,8], index: 0, kind: input, shape index: {}]   ;;  %s979_s1 = inlined_call_operand.vmem [shape: f32[9,128], index: 1, kind: output, shape index: {}]  }
   0x1   :  { %v470_v0 = vld [vmem:[%s978_s0 + $0x8e] sm:$0x1]   ;;  %v464_v1 = vld [vmem:[%s978_s0 + $0x8f] sm:$0x1]   ;;  %s565_s12 = smov 112   ;;  %s566_s13 = smov 120  }
   0x2   :  { %76 = vrot.lane.b32.xlu1 %v470_v0, %s565_s12  ;;  %47 = vrot.lane.b32.xlu0 %v464_v1, %s566_s13  ;;  %v466_v2 = vld [vmem:[%s978_s0 + $0xe] ss:$16 sm:%s53_s10]   ;;  %s61_s16 = smov 48  ;;  %s66_s17 = smov 192  ;;  %vm43_vm4 = vcmask 1048512   ;;  %vm72_vm5 = vcmask 982912  }
   0x3   :  { %v467_v3 = vld [vmem:[%s978_s0 + $0xe] ss:$16 sm:%s56_s11]   ;;  %s24_s22 = smov 3  ;;  %s27_s23 = smov 12  ;;  %v476_v15 = vld [vmem:[%s978_s0 + $0x8d] sm:$0x1]  }
   0x4   :  { %v468_v4 = vld [vmem:[%s978_s0 + $0xe] ss:$16 sm:%s61_s16]   ;;  %v59_v5 = vsel %vm6_vm0, %v467_v3, %v466_v2  ;;  %v460_v7 = vld [vmem:[%s978_s0 + $0xf] ss:$16 sm:%s24_s22]   ;;  %s32_s28 = smov 48  ;;  %s37_s29 = smov 192 }
   0x5   :  { %v469_v6 = vld [vmem:[%s978_s0 + $0xe] ss:$16 sm:%s66_s17]   ;;  %v64_v8 = vsel %vm10_vm1, %v468_v4, %v59_v5  ;;  %v461_v9 = vld [vmem:[%s978_s0 + $0xf] ss:$16 sm:%s27_s23]   ;;  %s82_s5 = smov 3  ;;  %s85_s8 = smov 12 }
   0x6   :  { %v462_v10 = vld [vmem:[%s978_s0 + $0xf] ss:$16 sm:%s32_s28]   ;;  %v69_v11 = vsel %vm14_vm2, %v469_v6, %v64_v8  ;;  %v30_v12 = vsel %vm6_vm0, %v461_v9, %v460_v7  ;;  %s90_s9 = smov 48  ;;  %v472_v16 = vld [vmem:[%s978_s0 + $0xd] ss:$16 sm:%s82_s5]   ;;  %s95_s15 = smov 192 }
   0x7   :  { %v463_v13 = vld [vmem:[%s978_s0 + $0xf] ss:$16 sm:%s37_s29]   ;;  %70 = vrot.lane.b32.xlu1 %v69_v11, %s565_s12  ;;  %v35_v14 = vsel %vm10_vm1, %v462_v10, %v30_v12  ;;  %s111_s20 = smov 3  ;;  %s114_s21 = smov 12  ;;  %v482_v26 = vld [vmem:[%s978_s0 + $0x8c] sm:$0x1]  }
   0x8   :  { %v40_v17 = vsel %vm14_vm2, %v463_v13, %v35_v14  ;;  %v473_v18 = vld [vmem:[%s978_s0 + $0xd] ss:$16 sm:%s85_s8]   ;;  %s119_s23 = smov 48  ;;  %s124_s24 = smov 192  ;;  %v478_v23 = vld [vmem:[%s978_s0 + $0xc] ss:$16 sm:%s111_s20]  }
   0x9   :  { %v474_v19 = vld [vmem:[%s978_s0 + $0xd] ss:$16 sm:%s90_s9]   ;;  %41 = vrot.lane.b32.xlu0 %v40_v17, %s566_s13  ;;  %v88_v20 = vsel %vm6_vm0, %v473_v18, %v472_v16  ;;  %s140_s29 = smov 3  ;;  %s567_s30 = smov 104   ;;  %v488_v37 = vld [vmem:[%s978_s0 + $0x8b] sm:$0x1]  }
   0xa   :  { %v475_v21 = vld [vmem:[%s978_s0 + $0xd] ss:$16 sm:%s95_s15]   ;;  %v93_v22 = vsel %vm10_vm1, %v474_v19, %v88_v20  ;;  %v479_v24 = vld [vmem:[%s978_s0 + $0xc] ss:$16 sm:%s114_s21]   ;;  %s143_s6 = smov 12  ;;  %s148_s7 = smov 48 }
   0xb   :  { %105 = vrot.lane.b32.xlu1 %v476_v15, %s567_s30  ;;  %v98_v25 = vsel %vm14_vm2, %v475_v21, %v93_v22  ;;  %v117_v27 = vsel %vm6_vm0, %v479_v24, %v478_v23  ;;  %v480_v28 = vld [vmem:[%s978_s0 + $0xc] ss:$16 sm:%s119_s23]   ;;  %s153_s12 = smov 192  ;;  %s169_s16 = smov 3  ;;  %v494_v46 = vld [vmem:[%s978_s0 + $0x8a] sm:$0x1]  }
   0xc   :  { %v122_v29 = vsel %vm10_vm1, %v480_v28, %v117_v27  ;;  %v481_v30 = vld [vmem:[%s978_s0 + $0xc] ss:$16 sm:%s124_s24]   ;;  %v484_v31 = vld [vmem:[%s978_s0 + $0xb] ss:$16 sm:%s140_s29]   ;;  %s172_s17 = smov 12  ;;  %s177_s13 = smov 48 }
   0xd   :  { %99 = vrot.lane.b32.xlu0 %v98_v25, %s567_s30  ;;  %v485_v32 = vld [vmem:[%s978_s0 + $0xb] ss:$16 sm:%s143_s6]   ;;  %v127_v33 = vsel %vm14_vm2, %v481_v30, %v122_v29  ;;  %s568_s22 = smov 96   ;;  %s198_s27 = smov 3  ;;  %v500_v54 = vld [vmem:[%s978_s0 + $0x89] sm:$0x1]  }
   0xe   :  { %v146_v34 = vsel %vm6_vm0, %v485_v32, %v484_v31  ;;  %v486_v35 = vld [vmem:[%s978_s0 + $0xb] ss:$16 sm:%s148_s7]   ;;  %v490_v39 = vld [vmem:[%s978_s0 + $0xa] ss:$16 sm:%s169_s16]   ;;  %s182_s3 = smov 192  ;;  %s201_s4 = smov 12 }
   0xf   :  { %v487_v36 = vld [vmem:[%s978_s0 + $0xb] ss:$16 sm:%s153_s12]   ;;  %134 = vrot.lane.b32.xlu1 %v482_v26, %s568_s22  ;;  %v151_v38 = vsel %vm10_vm1, %v486_v35, %v146_v34  ;;  %s206_s5 = smov 48  ;;  %s227_s10 = smov 3  ;;  %v506_v62 = vld [vmem:[%s978_s0 + $0x88] sm:$0x1]  }
  0x10   :  { %v491_v40 = vld [vmem:[%s978_s0 + $0xa] ss:$16 sm:%s172_s17]   ;;  %v156_v43 = vsel %vm14_vm2, %v487_v36, %v151_v38  ;;  %v496_v44 = vld [vmem:[%s978_s0 + $0x9] ss:$16 sm:%s198_s27]   ;;  %s230_s11 = smov 12  ;;  %s569_s12 = smov 88  }
  0x11   :  { %v492_v41 = vld [vmem:[%s978_s0 + $0xa] ss:$16 sm:%s177_s13]   ;;  %128 = vrot.lane.b32.xlu0 %v127_v33, %s568_s22  ;;  %v175_v42 = vsel %vm6_vm0, %v491_v40, %v490_v39  ;;  %s211_s20 = smov 192  ;;  %s235_s24 = smov 48  ;;  %v512_v6 = vld [vmem:[%s978_s0 + $0x87] sm:$0x1]  }
  0x12   :  { %v497_v45 = vld [vmem:[%s978_s0 + $0x9] ss:$16 sm:%s201_s4]   ;;  %v180_v47 = vsel %vm10_vm1, %v492_v41, %v175_v42  ;;  %v493_v48 = vld [vmem:[%s978_s0 + $0xa] ss:$16 sm:%s182_s3]   ;;  %s256_s25 = smov 3  ;;  %s259_s26 = smov 12 }
  0x13   :  { %163 = vrot.lane.b32.xlu1 %v488_v37, %s569_s12  ;;  %v204_v49 = vsel %vm6_vm0, %v497_v45, %v496_v44  ;;  %v498_v50 = vld [vmem:[%s978_s0 + $0x9] ss:$16 sm:%s206_s5]   ;;  %v185_v53 = vsel %vm14_vm2, %v493_v48, %v180_v47  ;;  %s570_s27 = smov 80   ;;  %s240_s5 = smov 192  ;;  %v458_v9 = vld [vmem:[%s978_s0 + $0x80] sm:$0x1]  }
  0x14   :  { %v502_v51 = vld [vmem:[%s978_s0 + $0x8] ss:$16 sm:%s227_s10]   ;;  %v209_v55 = vsel %vm10_vm1, %v498_v50, %v204_v49  ;;  %v499_v56 = vld [vmem:[%s978_s0 + $0x9] ss:$16 sm:%s211_s20]   ;;  %s264_s10 = smov 48  ;;  %s571_s14 = smov 72  }
  0x15   :  { %157 = vrot.lane.b32.xlu0 %v156_v43, %s569_s12  ;;  %v503_v52 = vld [vmem:[%s978_s0 + $0x8] ss:$16 sm:%s230_s11]   ;;  %s285_s11 = smov 3  ;;  %v214_v61 = vsel %vm14_vm2, %v499_v56, %v209_v55  ;;  %s288_s12 = smov 12  ;;  %459 = vst.msk [vmem:[%s979_s1 + $0x8] sm:$0x1] %vm16_vm3, %v458_v9  }
  0x16   :  { %v233_v57 = vsel %vm6_vm0, %v503_v52, %v502_v51  ;;  %v504_v58 = vld [vmem:[%s978_s0 + $0x8] ss:$16 sm:%s235_s24]   ;;  %v508_v59 = vld [vmem:[%s978_s0 + $0x7] ss:$16 sm:%s256_s25]   ;;  %s269_s21 = smov 192  ;;  %s293_s25 = smov 48 }
  0x17   :  { %192 = vrot.lane.b32.xlu1 %v494_v46, %s570_s27  ;;  %v509_v60 = vld [vmem:[%s978_s0 + $0x7] ss:$16 sm:%s259_s26]   ;;  %v238_v63 = vsel %vm10_vm1, %v504_v58, %v233_v57  ;;  %s314_s26 = smov 3  ;;  %s317_s29 = smov 12  ;;  %v518_v15 = vld [vmem:[%s978_s0 + $0x86] sm:$0x1]  }
  0x18   :  { %v505_v0 = vld [vmem:[%s978_s0 + $0x8] ss:$16 sm:%s240_s5]   ;;  %v262_v1 = vsel %vm6_vm0, %v509_v60, %v508_v59  ;;  %v510_v2 = vld [vmem:[%s978_s0 + $0x7] ss:$16 sm:%s264_s10]   ;;  %s572_s30 = smov 64   ;;  %s298_s8 = smov 192 }
  0x19   :  { %186 = vrot.lane.b32.xlu0 %v185_v53, %s570_s27  ;;  %v514_v3 = vld [vmem:[%s978_s0 + $0x6] ss:$16 sm:%s285_s11]   ;;  %v243_v5 = vsel %vm14_vm2, %v505_v0, %v238_v63  ;;  %v267_v7 = vsel %vm10_vm1, %v510_v2, %v262_v1  ;;  %s322_s16 = smov 48  ;;  %s343_s17 = smov 3  ;;  %v524_v23 = vld [vmem:[%s978_s0 + $0x85] sm:$0x1]  }
  0x1a   :  { %v515_v4 = vld [vmem:[%s978_s0 + $0x6] ss:$16 sm:%s288_s12]   ;;  %v511_v8 = vld [vmem:[%s978_s0 + $0x7] ss:$16 sm:%s269_s21]   ;;  %s346_s18 = smov 12  ;;  %s573_s19 = smov 56  }
  0x1b   :  { %221 = vrot.lane.b32.xlu1 %v500_v54, %s571_s14  ;;  %v291_v10 = vsel %vm6_vm0, %v515_v4, %v514_v3  ;;  %v516_v11 = vld [vmem:[%s978_s0 + $0x6] ss:$16 sm:%s293_s25]   ;;  %v272_v14 = vsel %vm14_vm2, %v511_v8, %v267_v7  ;;  %s327_s25 = smov 192  ;;  %s351_s28 = smov 48  ;;  %v530_v35 = vld [vmem:[%s978_s0 + $0x84] sm:$0x1]  }
  0x1c   :  { %v520_v12 = vld [vmem:[%s978_s0 + $0x5] ss:$16 sm:%s314_s26]   ;;  %v296_v16 = vsel %vm10_vm1, %v516_v11, %v291_v10  ;;  %v517_v17 = vld [vmem:[%s978_s0 + $0x6] ss:$16 sm:%s298_s8]   ;;  %s356_s2 = smov 192  ;;  %s372_s3 = smov 3 }
  0x1d   :  { %215 = vrot.lane.b32.xlu0 %v214_v61, %s571_s14  ;;  %v521_v13 = vld [vmem:[%s978_s0 + $0x5] ss:$16 sm:%s317_s29]   ;;  %v301_v22 = vsel %vm14_vm2, %v517_v17, %v296_v16  ;;  %s375_s4 = smov 12  ;;  %s380_s5 = smov 48  ;;  %v536_v46 = vld [vmem:[%s978_s0 + $0x83] sm:$0x1]  }
  0x1e   :  { %v320_v18 = vsel %vm6_vm0, %v521_v13, %v520_v12  ;;  %v522_v19 = vld [vmem:[%s978_s0 + $0x5] ss:$16 sm:%s322_s16]   ;;  %v526_v20 = vld [vmem:[%s978_s0 + $0x4] ss:$16 sm:%s343_s17]   ;;  %s574_s6 = smov 48   ;;  %s2_s11 = smov 3 }
  0x1f   :  { %250 = vrot.lane.b32.xlu1 %v506_v62, %s572_s30  ;;  %v527_v21 = vld [vmem:[%s978_s0 + $0x4] ss:$16 sm:%s346_s18]   ;;  %v325_v24 = vsel %vm10_vm1, %v522_v19, %v320_v18  ;;  %s4_s12 = smov 12  ;;  %s8_s18 = smov 48  ;;  %v542_v56 = vld [vmem:[%s978_s0 + $0x82] sm:$0x1]  }
  0x20   :  { %v523_v25 = vld [vmem:[%s978_s0 + $0x5] ss:$16 sm:%s327_s25]   ;;  %v349_v26 = vsel %vm6_vm0, %v527_v21, %v526_v20  ;;  %v528_v27 = vld [vmem:[%s978_s0 + $0x4] ss:$16 sm:%s351_s28]   ;;  %s401_s22 = smov 3  ;;  %s12_s23 = smov 192 }
  0x21   :  { %244 = vrot.lane.b32.xlu0 %v243_v5, %s572_s30  ;;  %v532_v28 = vld [vmem:[%s978_s0 + $0x3] ss:$16 sm:%s372_s3]   ;;  %v330_v31 = vsel %vm14_vm2, %v523_v25, %v325_v24  ;;  %s404_s26 = smov 12  ;;  %v354_v36 = vsel %vm10_vm1, %v528_v27, %v349_v26  ;;  %s385_s7 = smov 192  ;;  %v548_v62 = vld [vmem:[%s978_s0 + $0x81] sm:$0x1]  }
  0x22   :  { %v529_v29 = vld [vmem:[%s978_s0 + $0x4] ss:$16 sm:%s356_s2]   ;;  %v533_v30 = vld [vmem:[%s978_s0 + $0x3] ss:$16 sm:%s375_s4]   ;;  %s575_s2 = smov 40   ;;  %s409_s15 = smov 48 }
  0x23   :  { %279 = vrot.lane.b32.xlu1 %v512_v6, %s573_s19  ;;  %v534_v32 = vld [vmem:[%s978_s0 + $0x3] ss:$16 sm:%s380_s5]   ;;  %v378_v39 = vsel %vm6_vm0, %v533_v30, %v532_v28  ;;  %s430_s16 = smov 3  ;;  %v359_v45 = vsel %vm14_vm2, %v529_v29, %v354_v36  ;;  %s433_s17 = smov 12  ;;  %vm101_vm6 = vcmask 917312   ;;  %vm130_vm7 = vcmask 851712  }
  0x24   :  { %v3_v33 = vld [vmem:[%s978_s0] ss:$16 sm:%s2_s11]   ;;  %v538_v40 = vld [vmem:[%s978_s0 + $0x2] ss:$16 sm:%s401_s22]   ;;  %s576_s20 = smov 32   ;;  %v383_v47 = vsel %vm10_vm1, %v534_v32, %v378_v39  ;;  %s577_s3 = smov 24  }
  0x25   :  { %273 = vrot.lane.b32.xlu0 %v272_v14, %s573_s19  ;;  %v5_v34 = vld [vmem:[%s978_s0] ss:$16 sm:%s4_s12]   ;;  %s443_s10 = smov 192  ;;  %s578_s11 = smov 16   ;;  %vm159_vm8 = vcmask 786112   ;;  %vm188_vm9 = vcmask 720512  }
  0x26   :  { %v7_v37 = vsel %vm6_vm0, %v5_v34, %v3_v33  ;;  %v9_v38 = vld [vmem:[%s978_s0] ss:$16 sm:%s8_s18]   ;;  %v539_v43 = vld [vmem:[%s978_s0 + $0x2] ss:$16 sm:%s404_s26]   ;;  %s414_s26 = smov 192  ;;  %vm217_vm10 = vcmask 654912  }
  0x27   :  { %308 = vrot.lane.b32.xlu1 %v518_v15, %s574_s6  ;;  %v11_v41 = vsel %vm10_vm1, %v9_v38, %v7_v37  ;;  %v13_v42 = vld [vmem:[%s978_s0] ss:$16 sm:%s12_s23]   ;;  %v407_v49 = vsel %vm6_vm0, %v539_v43, %v538_v40  ;;  %vm246_vm11 = vcmask 589312   ;;  %vm275_vm12 = vcmask 523712  }
  0x28   :  { %v15_v44 = vsel %vm14_vm2, %v13_v42, %v11_v41  ;;  %v535_v48 = vld [vmem:[%s978_s0 + $0x3] ss:$16 sm:%s385_s7]   ;;  %v540_v50 = vld [vmem:[%s978_s0 + $0x2] ss:$16 sm:%s409_s15]   ;;  %vm304_vm13 = vcmask 458112   ;;  %vm333_vm14 = vcmask 392512  }
  0x29   :  { %302 = vrot.lane.b32.xlu0 %v301_v22, %s574_s6  ;;  %17 = vst.msk [vmem:[%s979_s1] sm:$0xff] %vm16_vm3, %v15_v44   ;;  %v544_v51 = vld [vmem:[%s978_s0 + $0x1] ss:$16 sm:%s430_s16]   ;;  %v388_v53 = vsel %vm14_vm2, %v535_v48, %v383_v47  ;;  %v412_v54 = vsel %vm10_vm1, %v540_v50, %v407_v49  ;;  %vm362_vm15 = vcmask 326912  }
  0x2a   :  { %v545_v52 = vld [vmem:[%s978_s0 + $0x1] ss:$16 sm:%s433_s17]   ;;  %v541_v55 = vld [vmem:[%s978_s0 + $0x2] ss:$16 sm:%s414_s26]  }
  0x2b   :  { %337 = vrot.lane.b32.xlu1 %v524_v23, %s575_s2  ;;  %v436_v57 = vsel %vm6_vm0, %v545_v52, %v544_v51  ;;  %v417_v59 = vsel %vm14_vm2, %v541_v55, %v412_v54  ;;  %v547_v61 = vld [vmem:[%s978_s0 + $0x1] ss:$16 sm:%s443_s10]   ;;  %vm391_vm0 = vcmask 261312  }
  0x2d   :  { %331 = vrot.lane.b32.xlu0 %v330_v31, %s575_s2  ;;  %s438_s2 = smov 48 }
  0x2e   :  { %v546_v58 = vld [vmem:[%s978_s0 + $0x1] ss:$16 sm:%s438_s2]   ;;  %s579_s0 = smov 8  }
  0x2f   :  { %366 = vrot.lane.b32.xlu1 %v530_v35, %s576_s20  ;;  %v441_v60 = vsel %vm10_vm1, %v546_v58, %v436_v57  ;;  %vm420_vm1 = vcmask 195712  }
  0x30   :  { %v446_v63 = vsel %vm14_vm2, %v547_v61, %v441_v60  ;;  %vm449_vm2 = vcmask 130112  }
  0x31   :  { %360 = vrot.lane.b32.xlu0 %v359_v45, %s576_s20 }
  0x33   :  { %395 = vrot.lane.b32.xlu1 %v536_v46, %s577_s3 }
  0x35   :  { %389 = vrot.lane.b32.xlu0 %v388_v53, %s577_s3 }
  0x37   :  { %424 = vrot.lane.b32.xlu1 %v542_v56, %s578_s11 }
  0x39   :  { %418 = vrot.lane.b32.xlu0 %v417_v59, %s578_s11 }
  0x3b   :  { %453 = vrot.lane.b32.xlu1 %v548_v62, %s579_s0 }
  0x3d   :  { %447 = vrot.lane.b32.xlu0 %v446_v63, %s579_s0 }
  0x74   :  { %v77_v0 = vpop.permute.xlu1 %76   ;;  %v48_v1 = vpop.permute.xlu0 %47  }
  0x75   :  { %465 = vst.msk [vmem:[%s979_s1 + $0x8] sm:$0x1] %vm43_vm4, %v48_v1  }
  0x76   :  { %471 = vst.msk [vmem:[%s979_s1 + $0x8] sm:$0x1] %vm72_vm5, %v77_v0  }
  0x79   :  { %v71_v2 = vpop.permute.xlu1 %70  }
  0x7b   :  { %v42_v3 = vpop.permute.xlu0 %41  }
  0x7c   :  { %44 = vst.msk [vmem:[%s979_s1] sm:$0xff] %vm43_vm4, %v42_v3  }
  0x7d   :  { %73 = vst.msk [vmem:[%s979_s1] sm:$0xff] %vm72_vm5, %v71_v2   ;;  %v106_v4 = vpop.permute.xlu1 %105  }
  0x7e   :  { %477 = vst.msk [vmem:[%s979_s1 + $0x8] sm:$0x1] %vm101_vm6, %v106_v4  }
  0x7f   :  { %v100_v5 = vpop.permute.xlu0 %99  }
  0x80   :  { %102 = vst.msk [vmem:[%s979_s1] sm:$0xff] %vm101_vm6, %v100_v5  }
  0x81   :  { %v135_v6 = vpop.permute.xlu1 %134  }
  0x82   :  { %483 = vst.msk [vmem:[%s979_s1 + $0x8] sm:$0x1] %vm130_vm7, %v135_v6  }
  0x83   :  { %v129_v7 = vpop.permute.xlu0 %128  }
  0x84   :  { %131 = vst.msk [vmem:[%s979_s1] sm:$0xff] %vm130_vm7, %v129_v7  }
  0x85   :  { %v164_v8 = vpop.permute.xlu1 %163  }
  0x86   :  { %489 = vst.msk [vmem:[%s979_s1 + $0x8] sm:$0x1] %vm159_vm8, %v164_v8  }
  0x87   :  { %v158_v9 = vpop.permute.xlu0 %157  }
  0x88   :  { %160 = vst.msk [vmem:[%s979_s1] sm:$0xff] %vm159_vm8, %v158_v9  }
  0x89   :  { %v193_v10 = vpop.permute.xlu1 %192  }
  0x8a   :  { %495 = vst.msk [vmem:[%s979_s1 + $0x8] sm:$0x1] %vm188_vm9, %v193_v10  }
  0x8b   :  { %v187_v11 = vpop.permute.xlu0 %186  }
  0x8c   :  { %189 = vst.msk [vmem:[%s979_s1] sm:$0xff] %vm188_vm9, %v187_v11  }
  0x8d   :  { %v222_v12 = vpop.permute.xlu1 %221  }
  0x8e   :  { %501 = vst.msk [vmem:[%s979_s1 + $0x8] sm:$0x1] %vm217_vm10, %v222_v12  }
  0x8f   :  { %v216_v13 = vpop.permute.xlu0 %215  }
  0x90   :  { %218 = vst.msk [vmem:[%s979_s1] sm:$0xff] %vm217_vm10, %v216_v13  }
  0x91   :  { %v251_v14 = vpop.permute.xlu1 %250  }
  0x92   :  { %507 = vst.msk [vmem:[%s979_s1 + $0x8] sm:$0x1] %vm246_vm11, %v251_v14  }
  0x93   :  { %v245_v15 = vpop.permute.xlu0 %244  }
  0x94   :  { %247 = vst.msk [vmem:[%s979_s1] sm:$0xff] %vm246_vm11, %v245_v15  }
  0x95   :  { %v280_v16 = vpop.permute.xlu1 %279  }
  0x96   :  { %513 = vst.msk [vmem:[%s979_s1 + $0x8] sm:$0x1] %vm275_vm12, %v280_v16  }
  0x97   :  { %v274_v17 = vpop.permute.xlu0 %273  }
  0x98   :  { %276 = vst.msk [vmem:[%s979_s1] sm:$0xff] %vm275_vm12, %v274_v17  }
  0x99   :  { %v309_v18 = vpop.permute.xlu1 %308  }
  0x9a   :  { %519 = vst.msk [vmem:[%s979_s1 + $0x8] sm:$0x1] %vm304_vm13, %v309_v18  }
  0x9b   :  { %v303_v19 = vpop.permute.xlu0 %302  }
  0x9c   :  { %305 = vst.msk [vmem:[%s979_s1] sm:$0xff] %vm304_vm13, %v303_v19  }
  0x9d   :  { %v338_v20 = vpop.permute.xlu1 %337  }
  0x9e   :  { %525 = vst.msk [vmem:[%s979_s1 + $0x8] sm:$0x1] %vm333_vm14, %v338_v20  }
  0x9f   :  { %v332_v21 = vpop.permute.xlu0 %331  }
  0xa0   :  { %334 = vst.msk [vmem:[%s979_s1] sm:$0xff] %vm333_vm14, %v332_v21  }
  0xa1   :  { %v367_v22 = vpop.permute.xlu1 %366  }
  0xa2   :  { %531 = vst.msk [vmem:[%s979_s1 + $0x8] sm:$0x1] %vm362_vm15, %v367_v22  }
  0xa3   :  { %v361_v23 = vpop.permute.xlu0 %360  }
  0xa4   :  { %363 = vst.msk [vmem:[%s979_s1] sm:$0xff] %vm362_vm15, %v361_v23  }
  0xa5   :  { %v396_v24 = vpop.permute.xlu1 %395  }
  0xa6   :  { %537 = vst.msk [vmem:[%s979_s1 + $0x8] sm:$0x1] %vm391_vm0, %v396_v24  }
  0xa7   :  { %v390_v25 = vpop.permute.xlu0 %389  }
  0xa8   :  { %392 = vst.msk [vmem:[%s979_s1] sm:$0xff] %vm391_vm0, %v390_v25  }
  0xa9   :  { %v425_v26 = vpop.permute.xlu1 %424  }
  0xaa   :  { %543 = vst.msk [vmem:[%s979_s1 + $0x8] sm:$0x1] %vm420_vm1, %v425_v26  }
  0xab   :  { %v419_v27 = vpop.permute.xlu0 %418  }
  0xac   :  { %421 = vst.msk [vmem:[%s979_s1] sm:$0xff] %vm420_vm1, %v419_v27  }
  0xad   :  { %v454_v28 = vpop.permute.xlu1 %453  }
  0xae   :  { %549 = vst.msk [vmem:[%s979_s1 + $0x8] sm:$0x1] %vm449_vm2, %v454_v28  }
  0xaf   :  { %v448_v29 = vpop.permute.xlu0 %447  }
  0xb0   :  { %450 = vst.msk [vmem:[%s979_s1] sm:$0xff] %vm449_vm2, %v448_v29  }

// kernel: dwconv_nop_forward.1
= control target key start
LH: loop header
LB: loop body
LE: loop exit
PB: predicated region body
PF: predicated region fallthrough
CT: control target
= control target key end

     0   :  { %s632_s9 = smov 0   ;;  %s787_s0 = inlined_call_operand.vmem [shape: f32[2,16,128], index: 0, kind: input, shape index: {}]   ;;  %s788_s1 = inlined_call_operand.vmem [shape: f32[10,128], index: 1, kind: input, shape index: {}]   ;;  %s789_s2 = inlined_call_operand.vmem [shape: f32[2,16,128], index: 2, kind: output, shape index: {}]  }
   0x1 LB: > { %s568_s10 = sadd.s32 4294967295, %s610_s9   ;;  %p572_p0 = scmp.ge.s32.totalorder %s610_s9, 1  ;;  %s610_s9 = sphi %s632_s9, %s12_s9  }
   0x2   : > { %p112_p1 = scmp.lt.s32.totalorder %s610_s9, 3 }
   0x4   : > { %p113_p2 = pnand %p572_p0, %p112_p1 }
   0x5   : > { %p134_p3 = scmp.lt.s32.totalorder (!%p113_p2), %s568_s10, 1  ;;  %s613_s19 = smov (!%p113_p2), 8  }
   0x6   : > { %116 = sbr.rel (%p113_p2) target bundleno = 345 (0x159), region = 28  ;;  %s614_s20 = smov (!%p113_p2), 16  }
   0x7   : > { %s615_s21 = smov (!%p113_p2), 120   ;;  %s616_s22 = smov (!%p113_p2), 112  }
   0xb   : > { %v144_v0 = vlaneseq  ;;  %vm156_vm0 = vcmask 58368   ;;  %vm161_vm1 = vcmask 123968   ;;  %s791_s10 = smov (!%p134_p3, %s568_s10), 1  ;;  %vm153_vm3 = vcmask 64512   ;;  %v191_v6 = vld [vmem:[%s788_s1] sm:$0xff] }
   0xc   : > { %v612_v2 = vmov 0.0   ;;  %vm158_vm4 = vcmask 130112   ;;  %s581_s11 = sshll.u32 %s791_s10, 4  ;;  %vm167_vm5 = vcmask 1040384   ;;  %v192_v9 = vld [vmem:[%s788_s1 + $0x8] sm:$0x3] }
   0xd   : > { %v196_v1 = vshrl.u32 %v144_v0, 7  ;;  %vm146_vm2 = vcmp.lt.s32.totalorder %v144_v0, 144  ;;  %155 = vst.msk [vmem:[#allocation2 + $0x10] sm:$0xff] %vm153_vm3, %v612_v2  ;;  %s138_s14 = scalar_lea.vmem %s787_s0, %s581_s11  ;;  %vm187_vm6 = vcmask 1040448   ;;  %vm189_vm7 = vcmask 57344   ;;  %s143_s25 = scalar_lea.vmem %s789_s2, %s581_s11 }
   0xe   : > { %151 = vst.msk [vmem:[#allocation2 + $0x21] ss:$8 sm:$0x3] %vm146_vm2, %v612_v2  ;;  %148 = vst.msk [vmem:[#allocation2] ss:$8 sm:$0x3] %vm146_vm2, %v612_v2 }
   0xf   : > { %157 = vst.msk [vmem:[#allocation2 + $0x20] sm:$0x3] %vm156_vm0, %v612_v2  ;;  %v207_v3 = vsub.s32 1, %v196_v1  ;;  %v164_v4 = vld [vmem:[%s138_s14 + $0x8] sm:$0xff]  ;;  %v163_v5 = vld [vmem:[%s138_s14] sm:$0xff]  ;;  %v293_v10 = vsub.s32 4, %v196_v1 }
  0x10   : > { %162 = vst.msk [vmem:[#allocation2 + $0x28] sm:$0x3] %vm161_vm1, %v612_v2  ;;  %v169_v7 = vrot.slane %v164_v4, 7  ;;  %v168_v8 = vrot.slane %v163_v5, 7  ;;  %v238_v13 = vsub.s32 2, %v196_v1  ;;  %v197_v14 = vsub.s32 0, %v196_v1 }
  0x11   : > { %154 = vst.msk [vmem:[#allocation2] sm:$0xff] %vm153_vm3, %v612_v2  ;;  %v656_v11 = vrot.slane %v192_v9, %v207_v3  ;;  %v208_v12 = vrot.slane %v191_v6, %v207_v3  ;;  %v271_v15 = vsub.s32 3, %v196_v1  ;;  %v294_v19 = vrot.slane %v191_v6, %v293_v10 }
  0x12   : > { %159 = vst.msk [vmem:[#allocation2 + $0x8] sm:$0xff] %vm158_vm4, %v612_v2  ;;  %160 = vst.msk [vmem:[#allocation2 + $0x18] sm:$0xff] %vm158_vm4, %v612_v2  ;;  %175 = vrot.lane.b32.xlu1 %v169_v7, %s613_s19  ;;  %171 = vrot.lane.b32.xlu0 %v168_v8, %s613_s19  ;;  %v170_v16 = vsel %vm167_vm5, %v168_v8, %v169_v7  ;;  %v658_v17 = vrot.slane %v191_v6, %v197_v14  ;;  %v405_v21 = vsub.s32 7, %v196_v1  ;;  %vm180_vm8 = vcmask 1047617  }
  0x13   : > { %v660_v18 = vrot.slane %v191_v6, %v271_v15  ;;  %v239_v20 = vrot.slane %v191_v6, %v238_v13  ;;  %v337_v22 = vsub.s32 5, %v196_v1  ;;  %v383_v23 = vsub.s32 6, %v196_v1 }
  0x14   : > { %v406_v25 = vrot.slane %v191_v6, %v405_v21  ;;  %v450_v27 = vrot.slane %v192_v9, %v197_v14  ;;  %vm182_vm9 = vcmask 64513   ;;  %vm184_vm10 = vcmask 1047616  }
  0x15   : > { %v662_v24 = vrot.slane %v191_v6, %v383_v23  ;;  %v338_v26 = vrot.slane %v191_v6, %v337_v22  ;;  %vm279_vm11 = vcmask 1046528   ;;  %vm391_vm12 = vcmask 1045504  }
  0x16   : > { %210 = vrot.lane.b32.xlu1 %v208_v12, %s613_s19  ;;  %173 = vrot.lane.b32.xlu0 %v170_v16, %s613_s19  ;;  %vm229_vm13 = vcmask 982016   ;;  %vm260_vm14 = vcmask 916480  }
  0x1a   : > { %296 = vrot.lane.b32.xlu1 %v294_v19, %s613_s19  ;;  %241 = vrot.lane.b32.xlu0 %v239_v20, %s614_s20 }
  0x1e   : > { %408 = vrot.lane.b32.xlu1 %v406_v25, %s613_s19  ;;  %340 = vrot.lane.b32.xlu0 %v338_v26, %s614_s20 }
  0x22   : > { %452 = vrot.lane.b32.xlu0 %v450_v27, %s614_s20 }
  0x84   : > { %v176_v28 = vpop.permute.xlu1 %175  ;;  %v172_v29 = vpop.permute.xlu0 %171 }
  0x85   : > { %188 = vst.msk [vmem:[#allocation2 + $0x20] sm:$0x1] %vm187_vm6, %v176_v28 }
  0x86   : > { %190 = vst.msk [vmem:[#allocation2 + $0x28] sm:$0x1] %vm189_vm7, %v176_v28 }
  0x87   : > { %181 = vst.msk [vmem:[#allocation2] sm:$0xfe] %vm180_vm8, %v172_v29 }
  0x88   : > { %183 = vst.msk [vmem:[#allocation2 + $0x8] sm:$0xfe] %vm182_vm9, %v172_v29  ;;  %v174_v30 = vpop.permute.xlu0 %173  ;;  %v211_v31 = vpop.permute.xlu1 %210 }
  0x89   : > { %185 = vst.msk [vmem:[#allocation2 + $0x10] sm:$0xff] %vm184_vm10, %v174_v30 }
  0x8a   : > { %186 = vst.msk [vmem:[#allocation2 + $0x18] sm:$0xff] %vm153_vm3, %v174_v30 }
  0x8c   : > { %v268_v37 = vld [vmem:[#allocation2 + $0x20] sm:$0x1]  ;;  %v242_v38 = vpop.permute.xlu0 %241  ;;  %v297_v46 = vpop.permute.xlu1 %296 }
  0x8d   : > { %v674_v41 = vmul.f32 %v660_v18, %v268_v37  ;;  %v290_v52 = vld [vmem:[#allocation2 + $0x28] sm:$0x1]  ;;  %v303_v59 = vmul.f32 %v297_v46, %v268_v37  ;;  %v696_v10 = vld [vmem:[#allocation2 + $0x20] sm:$0x3] }
  0x8e   : > { %v193_v32 = vld [vmem:[#allocation2] sm:$0xff]  ;;  %v304_v58 = vmul.f32 %v297_v46, %v290_v52  ;;  %v387_v26 = vmul.f32 %v662_v24, %v696_v10 }
  0x8f   : > { %v203_v33 = vld [vmem:[#allocation2 + $0x8] sm:$0xff]  ;;  %v213_v34 = vmul.f32 %v211_v31, %v193_v32  ;;  %v267_v36 = vld [vmem:[#allocation2] sm:$0xfe]  ;;  %v668_v39 = vmul.f32 %v658_v17, %v193_v32  ;;  %v244_v43 = vmul.f32 %v242_v38, %v193_v32  ;;  %v317_v4 = vrot.slane %v303_v59, 1 }
  0x90   : > { %v214_v35 = vmul.f32 %v211_v31, %v203_v33  ;;  %v671_v40 = vmul.f32 %v660_v18, %v267_v36  ;;  %v245_v42 = vmul.f32 %v242_v38, %v203_v33  ;;  %v678_v45 = vld [vmem:[#allocation2 + $0x10] sm:$0xff]  ;;  %v289_v49 = vld [vmem:[#allocation2 + $0x8] sm:$0xfe]  ;;  %v341_v53 = vpop.permute.xlu0 %340  ;;  %v299_v55 = vmul.f32 %v297_v46, %v267_v36  ;;  %v379_v6 = vld [vmem:[#allocation2] sm:$0xfc]  ;;  %v409_v30 = vpop.permute.xlu1 %408 }
  0x91   : > { %221 = vrot.lane.b32.xlu1 %v213_v34, %s615_s21  ;;  %v676_v44 = vld [vmem:[#allocation2 + $0x18] sm:$0xff]  ;;  %v215_v48 = vmul.f32 %v211_v31, %v678_v45  ;;  %v301_v51 = vmul.f32 %v297_v46, %v678_v45  ;;  %v300_v54 = vmul.f32 %v297_v46, %v289_v49  ;;  %v246_v57 = vmul.f32 %v242_v38, %v678_v45 }
  0x92   : > { %223 = vrot.lane.b32.xlu0 %v214_v35, %s615_s21  ;;  %v216_v47 = vmul.f32 %v211_v31, %v676_v44  ;;  %v302_v50 = vmul.f32 %v297_v46, %v676_v44  ;;  %v247_v56 = vmul.f32 %v242_v38, %v676_v44  ;;  %v344_v62 = vmul.f32 %v341_v53, %v289_v49  ;;  %v401_v38 = vld [vmem:[#allocation2 + $0x8] sm:$0xfc] }
  0x93   : > { %v312_v61 = vrot.slane %v301_v51, 1  ;;  %v314_v63 = vrot.slane %v300_v54, 1  ;;  %v311_v0 = vrot.slane %v299_v55, 1  ;;  %v346_v1 = vmul.f32 %v341_v53, %v676_v44 }
  0x94   : > { %v315_v60 = vrot.slane %v302_v50, 1  ;;  %v343_v2 = vmul.f32 %v341_v53, %v267_v36  ;;  %v319_v3 = vrot.slane %v304_v58, 1  ;;  %v345_v5 = vmul.f32 %v341_v53, %v678_v45 }
  0x95   : > { %252 = vrot.lane.b32.xlu1 %v244_v43, %s616_s22  ;;  %v313_v8 = vsel %vm279_vm11, %v311_v0, %v312_v61  ;;  %v348_v9 = vmul.f32 %v341_v53, %v290_v52  ;;  %v700_v12 = vmul.f32 %v658_v17, %v678_v45  ;;  %v358_v13 = vrot.slane %v344_v62, 1  ;;  %v453_v52 = vpop.permute.xlu0 %452 }
  0x96   : > { %254 = vrot.lane.b32.xlu0 %v245_v42, %s616_s22  ;;  %v316_v7 = vsel %vm279_vm11, %v314_v63, %v315_v60  ;;  %v274_v14 = vmul.f32 %v660_v18, %v678_v45  ;;  %v280_v15 = vrot.slane %v671_v40, 1  ;;  %v283_v16 = vrot.slane %v674_v41, 1 }
  0x97   : > { %v359_v19 = vrot.slane %v346_v1, 1  ;;  %v355_v20 = vrot.slane %v343_v2, 1  ;;  %v385_v21 = vmul.f32 %v662_v24, %v379_v6  ;;  %v386_v17 = vmul.f32 %v662_v24, %v678_v45 }
  0x98   : > { %v356_v22 = vrot.slane %v345_v5, 1  ;;  %v347_v23 = vmul.f32 %v341_v53, %v268_v37  ;;  %v281_v25 = vrot.slane %v274_v14, 1  ;;  %v320_v27 = vsel %vm279_vm11, %v315_v60, %v319_v3 }
  0x99   : > { %225 = vrot.lane.b32.xlu1 %v215_v48, %s615_s21  ;;  %v318_v18 = vsel %vm279_vm11, %v312_v61, %v317_v4  ;;  %v392_v28 = vrot.slane %v385_v21, 2  ;;  %v393_v29 = vrot.slane %v386_v17, 2  ;;  %v395_v33 = vrot.slane %v387_v26, 2 }
  0x9a   : > { %227 = vrot.lane.b32.xlu0 %v216_v47, %s615_s21  ;;  %v718_v31 = vsel %vm279_vm11, %v280_v15, %v281_v25  ;;  %v721_v32 = vsel %vm279_vm11, %v281_v25, %v283_v16  ;;  %v363_v34 = vrot.slane %v348_v9, 1  ;;  %v360_v35 = vsel %vm279_vm11, %v358_v13, %v359_v19  ;;  %v402_v47 = vld [vmem:[#allocation2 + $0x28] sm:$0x3] }
  0x9b   : > { %v724_v24 = vsel %vm391_vm12, %v392_v28, %v393_v29  ;;  %v357_v36 = vsel %vm279_vm11, %v355_v20, %v356_v22  ;;  %v361_v37 = vrot.slane %v347_v23, 1  ;;  %v729_v40 = vsel %vm391_vm12, %v393_v29, %v395_v33 }
  0x9c   : > { %v412_v41 = vmul.f32 %v409_v30, %v401_v38  ;;  %v414_v42 = vmul.f32 %v409_v30, %v676_v44  ;;  %v411_v43 = vmul.f32 %v409_v30, %v379_v6  ;;  %v413_v46 = vmul.f32 %v409_v30, %v678_v45 }
  0x9d   : > { %256 = vrot.lane.b32.xlu1 %v246_v57, %s616_s22  ;;  %v364_v48 = vsel %vm279_vm11, %v359_v19, %v363_v34  ;;  %v362_v49 = vsel %vm279_vm11, %v356_v22, %v361_v37  ;;  %v416_v50 = vmul.f32 %v409_v30, %v402_v47  ;;  %v415_v51 = vmul.f32 %v409_v30, %v696_v10 }
  0x9e   : > { %258 = vrot.lane.b32.xlu0 %v247_v56, %s616_s22  ;;  %v426_v53 = vrot.slane %v412_v41, 2  ;;  %v427_v54 = vrot.slane %v414_v42, 2  ;;  %v423_v55 = vrot.slane %v411_v43, 2  ;;  %v424_v56 = vrot.slane %v413_v46, 2 }
  0x9f   : > { %v431_v57 = vrot.slane %v416_v50, 2  ;;  %v429_v58 = vrot.slane %v415_v51, 2  ;;  %v456_v59 = vmul.f32 %v453_v52, %v401_v38  ;;  %v458_v60 = vmul.f32 %v453_v52, %v676_v44 }
  0xa0   : > { %v428_v61 = vsel %vm391_vm12, %v426_v53, %v427_v54  ;;  %v425_v62 = vsel %vm391_vm12, %v423_v55, %v424_v56  ;;  %v455_v63 = vmul.f32 %v453_v52, %v379_v6  ;;  %v457_v0 = vmul.f32 %v453_v52, %v678_v45 }
  0xa1   : > { %321 = vrot.lane.b32.xlu1 %v313_v8, %s615_s21  ;;  %v432_v1 = vsel %vm391_vm12, %v427_v54, %v431_v57  ;;  %v430_v2 = vsel %vm391_vm12, %v424_v56, %v429_v58  ;;  %v470_v3 = vrot.slane %v456_v59, 2  ;;  %v471_v4 = vrot.slane %v458_v60, 2 }
  0xa2   : > { %323 = vrot.lane.b32.xlu0 %v316_v7, %s615_s21  ;;  %v467_v5 = vrot.slane %v455_v63, 2  ;;  %v468_v7 = vrot.slane %v457_v0, 2  ;;  %v460_v44 = vmul.f32 %v453_v52, %v402_v47  ;;  %v459_v8 = vmul.f32 %v453_v52, %v696_v10 }
  0xa3   : > { %v472_v45 = vsel %vm391_vm12, %v470_v3, %v471_v4 }
  0xa4   : > { %v469_v6 = vsel %vm391_vm12, %v467_v5, %v468_v7  ;;  %v475_v9 = vrot.slane %v460_v44, 2  ;;  %v473_v13 = vrot.slane %v459_v8, 2 }
  0xa5   : > { %325 = vrot.lane.b32.xlu1 %v318_v18, %s615_s21 }
  0xa6   : > { %327 = vrot.lane.b32.xlu0 %v320_v27, %s615_s21  ;;  %v476_v14 = vsel %vm391_vm12, %v471_v4, %v475_v9  ;;  %v474_v15 = vsel %vm391_vm12, %v468_v7, %v473_v13 }
  0xa9   : > { %365 = vrot.lane.b32.xlu1 %v357_v36, %s616_s22 }
  0xaa   : > { %367 = vrot.lane.b32.xlu0 %v360_v35, %s616_s22 }
  0xad   : > { %369 = vrot.lane.b32.xlu1 %v362_v49, %s616_s22 }
  0xae   : > { %371 = vrot.lane.b32.xlu0 %v364_v48, %s616_s22 }
  0xb1   : > { %433 = vrot.lane.b32.xlu1 %v425_v62, %s615_s21 }
  0xb2   : > { %435 = vrot.lane.b32.xlu0 %v428_v61, %s615_s21 }
  0xb5   : > { %437 = vrot.lane.b32.xlu1 %v430_v2, %s615_s21 }
  0xb6   : > { %439 = vrot.lane.b32.xlu0 %v432_v1, %s615_s21 }
  0xb9   : > { %477 = vrot.lane.b32.xlu1 %v469_v6, %s616_s22 }
  0xba   : > { %479 = vrot.lane.b32.xlu0 %v472_v45, %s616_s22 }
  0xbd   : > { %481 = vrot.lane.b32.xlu1 %v474_v15, %s616_s22 }
  0xbe   : > { %483 = vrot.lane.b32.xlu0 %v476_v14, %s616_s22 }
 0x103   : > { %v222_v10 = vpop.permute.xlu1 %221 }
 0x104   : > { %v224_v16 = vpop.permute.xlu0 %223 }
 0x105   : > { %v230_v19 = vsel %vm229_vm13, %v222_v10, %v224_v16 }
 0x106   : > { %v234_v20 = vadd.f32 %v230_v19, %v668_v39 }
 0x107   : > { %v253_v21 = vpop.permute.xlu1 %252 }
 0x108   : > { %v255_v17 = vpop.permute.xlu0 %254 }
 0x109   : > { %v261_v22 = vsel %vm260_vm14, %v253_v21, %v255_v17 }
 0x10a   : > { %v265_v23 = vadd.f32 %v261_v22, %v234_v20 }
 0x10b   : > { %v226_v25 = vpop.permute.xlu1 %225 }
 0x10c   : > { %v228_v26 = vpop.permute.xlu0 %227  ;;  %v287_v27 = vadd.f32 %v718_v31, %v265_v23 }
 0x10d   : > { %v231_v18 = vsel %vm229_vm13, %v226_v25, %v228_v26 }
 0x10e   : > { %v235_v28 = vadd.f32 %v231_v18, %v700_v12 }
 0x10f   : > { %v257_v29 = vpop.permute.xlu1 %256 }
 0x110   : > { %v259_v30 = vpop.permute.xlu0 %258 }
 0x111   : > { %v262_v33 = vsel %vm260_vm14, %v257_v29, %v259_v30 }
 0x112   : > { %v266_v34 = vadd.f32 %v262_v33, %v235_v28 }
 0x113   : > { %v322_v35 = vpop.permute.xlu1 %321 }
 0x114   : > { %v324_v39 = vpop.permute.xlu0 %323  ;;  %v288_v36 = vadd.f32 %v721_v32, %v266_v34 }
 0x115   : > { %v329_v41 = vsel %vm229_vm13, %v322_v35, %v324_v39 }
 0x116   : > { %v333_v42 = vadd.f32 %v329_v41, %v287_v27 }
 0x117   : > { %v326_v37 = vpop.permute.xlu1 %325 }
 0x118   : > { %v328_v38 = vpop.permute.xlu0 %327 }
 0x119   : > { %v330_v46 = vsel %vm229_vm13, %v326_v37, %v328_v38 }
 0x11a   : > { %v334_v48 = vadd.f32 %v330_v46, %v288_v36 }
 0x11b   : > { %v366_v43 = vpop.permute.xlu1 %365 }
 0x11c   : > { %v368_v31 = vpop.permute.xlu0 %367 }
 0x11d   : > { %v373_v12 = vsel %vm260_vm14, %v366_v43, %v368_v31 }
 0x11e   : > { %v377_v47 = vadd.f32 %v373_v12, %v333_v42 }
 0x11f   : > { %v370_v49 = vpop.permute.xlu1 %369 }
 0x120   : > { %v372_v50 = vpop.permute.xlu0 %371  ;;  %v399_v51 = vadd.f32 %v724_v24, %v377_v47 }
 0x121   : > { %v374_v52 = vsel %vm260_vm14, %v370_v49, %v372_v50 }
 0x122   : > { %v378_v32 = vadd.f32 %v374_v52, %v334_v48 }
 0x123   : > { %v434_v53 = vpop.permute.xlu1 %433 }
 0x124   : > { %v436_v54 = vpop.permute.xlu0 %435  ;;  %v400_v55 = vadd.f32 %v729_v40, %v378_v32 }
 0x125   : > { %v441_v58 = vsel %vm229_vm13, %v434_v53, %v436_v54 }
 0x126   : > { %v445_v59 = vadd.f32 %v441_v58, %v399_v51 }
 0x127   : > { %v438_v56 = vpop.permute.xlu1 %437 }
 0x128   : > { %v440_v57 = vpop.permute.xlu0 %439 }
 0x129   : > { %v442_v62 = vsel %vm229_vm13, %v438_v56, %v440_v57 }
 0x12a   : > { %v446_v24 = vadd.f32 %v442_v62, %v400_v55 }
 0x12b   : > { %v478_v60 = vpop.permute.xlu1 %477 }
 0x12c   : > { %v480_v61 = vpop.permute.xlu0 %479 }
 0x12d   : > { %v485_v63 = vsel %vm260_vm14, %v478_v60, %v480_v61 }
 0x12e   : > { %v489_v0 = vadd.f32 %v485_v63, %v445_v59 }
 0x12f   : > { %v482_v2 = vpop.permute.xlu1 %481 }
 0x130   : > { %v495_v1 = vadd.f32 %v656_v11, %v489_v0  ;;  %v484_v3 = vpop.permute.xlu0 %483 }
 0x131   : > { %v486_v40 = vsel %vm260_vm14, %v482_v2, %v484_v3 }
 0x132   : > { %v577_v4 = vmul.f32 -1.442695, %v495_v1  ;;  %v490_v5 = vadd.f32 %v486_v40, %v446_v24 }
 0x134   : > { %596 = vpow2.f32 %v577_v4  ;;  %v496_v7 = vadd.f32 %v656_v11, %v490_v5 }
 0x136   : > { %v578_v44 = vmul.f32 -1.442695, %v496_v7 }
 0x138   : > { %598 = vpow2.f32 %v578_v44 }
 0x141   : > { %v597_v8 = vpop.eup %596 }
 0x142   : > { %v503_v45 = vadd.f32 1.0, %v597_v8 }
 0x144   : > { %600 = vrcp.f32 %v503_v45 }
 0x145   : > { %v599_v6 = vpop.eup %598 }
 0x146   : > { %v504_v9 = vadd.f32 1.0, %v599_v6 }
 0x148   : > { %602 = vrcp.f32 %v504_v9 }
 0x151   : > { %v601_v13 = vpop.eup %600 }
 0x152   : > { %v509_v14 = vmul.f32 %v601_v13, %v495_v1 }
 0x154   : > { %511 = vst [vmem:[%s143_s25] sm:$0xff] %v509_v14 }
 0x155   : > { %v603_v15 = vpop.eup %602 }
 0x156   : > { %v510_v10 = vmul.f32 %v603_v15, %v496_v7 }
 0x158   : > { %512 = vst [vmem:[%s143_s25 + $0x8] sm:$0xff] %v510_v10 }
 0x159 PF: > { %s12_s9 = sadd.s32 1, %s610_s9  }
 0x15a   : > { %p9_p4 = scmp.ge.s32.totalorder %s12_s9, 4  }
 0x15c   :  { %11 = sbr.rel (!%p9_p4) target bundleno = 1 (0x1), region = 59 }

</bundles_post_ra>
